<compile_context>
chip_gen: v7x
topology: tpu7x:2x2x1
jax: 0.10.0
libtpu: 0.0.40
codegen_flags: <defaults>
</compile_context>

<pallas_src>
import jax
import jax.numpy as jnp
from jax.experimental import pallas as pl
from jax.experimental.pallas import tpu as pltpu

ALPHA = 0.35           # APPNP alpha
K_PROP = 2             # APPNP K
SCALING_FACTOR = 1.8   # args.scaling_factor
NORM_EPS = 1e-12       # F.normalize eps


def _round_up(v, m):
    return (v + m - 1) // m * m


def make_encoder_kernel(block_rows):
    """Kernel over grid (phase, row_block).

    phase 0           : linear1 + tanh + L2-normalize * scale  -> h0 / hbuf[0]
    phase k in 1..K   : h_k[rows] = (1-a) * A_hat[rows,:] @ h_{k-1} + a * h0[rows]
    Output is written to HBM only in phase K.
    """

    def encoder_kernel(x_ref, w1_ref, b1_ref, a_ref, o_ref, h0_ref, hbuf_ref):
        phase = pl.program_id(0)
        i = pl.program_id(1)
        row0 = pl.multiple_of(i * block_rows, block_rows)
        rows = pl.ds(row0, block_rows)

        @pl.when(phase == 0)
        def _prologue():
            # ---- linear1 (f32, tiny) + tanh ----
            h = jnp.dot(x_ref[...], w1_ref[...],
                        preferred_element_type=jnp.float32)
            h = jnp.tanh(h + b1_ref[...])
            # ---- F.normalize(p=2, dim=1) * scaling_factor via rsqrt (EUP) ----
            # Padded output channels are exactly zero (zero w1/b1 cols), so the
            # row norm only sees the real channels.
            sumsq = jnp.sum(h * h, axis=1, keepdims=True)
            inv = jax.lax.rsqrt(jnp.maximum(sumsq, NORM_EPS * NORM_EPS))
            h = h * (inv * SCALING_FACTOR)
            h0_ref[rows, :] = h.astype(h0_ref.dtype)
            hbuf_ref[0, rows, :] = h.astype(hbuf_ref.dtype)

        @pl.when(phase > 0)
        def _propagate():
            prev = (phase - 1) % 2
            cur = phase % 2
            # bf16 x bf16 on the MXU, f32 accumulation.
            agg = jnp.dot(a_ref[...], hbuf_ref[prev],
                          preferred_element_type=jnp.float32)
            h_new = ((1.0 - ALPHA) * agg
                     + ALPHA * h0_ref[rows, :].astype(jnp.float32))
            hbuf_ref[cur, rows, :] = h_new.astype(hbuf_ref.dtype)

            # Only the final APPNP step produces the HBM output.
            @pl.when(phase == K_PROP)
            def _write_out():
                o_ref[...] = h_new.astype(o_ref.dtype)

    return encoder_kernel


def gcn_norm_dense(edge_index, num_nodes):
    """Dense GCN-normalized adjacency with self-loops (plain-JAX glue).

    Note: assumes a simple graph (duplicate edges are deduplicated by .set);
    PyG's gcn_norm would sum duplicate edge weights.
    """
    src, tgt = edge_index[0], edge_index[1]
    adj = jnp.zeros((num_nodes, num_nodes), jnp.float32)
    adj = adj.at[tgt, src].set(1.0)                       # message src -> tgt
    adj = adj + jnp.eye(num_nodes, dtype=jnp.float32)     # add self-loops
    deg = jnp.sum(adj, axis=1)                            # in-degree (+1)
    d_inv_sqrt = jnp.where(deg > 0, 1.0 / jnp.sqrt(deg), 0.0)
    return d_inv_sqrt[:, None] * adj * d_inv_sqrt[None, :]


def _pick_block_rows(n):
    if n < 256:
        return _round_up(n, 8)
    if n >= 4096:
        return 512      # bigger DMAs, closer to HBM roofline on all gens
    return 256


def build_a_hat(edge_index, n, n_pad):
    """bf16, zero-padded A_hat. Cache this when the graph is static."""
    a_hat = gcn_norm_dense(edge_index, n).astype(jnp.bfloat16)   # cast before pad
    return jnp.pad(a_hat, ((0, n_pad - n), (0, n_pad - n)))


def _estimate_vmem_bytes(n_pad, out_pad, br, in_ch):
    def buf(r, c, itemsize, sublane):
        return _round_up(r, sublane) * _round_up(c, 128) * itemsize
    # Resident scratch: h0 (bf16) + hbuf ping-pong (2 x bf16).
    state = 3 * buf(n_pad, out_pad, 2, 16)
    # Double-buffered pipeline tiles.
    tiles = 2 * (buf(br, n_pad, 2, 16)        # A_hat row tile
                 + buf(br, in_ch, 4, 8)       # x row tile
                 + buf(in_ch, out_pad, 4, 8)  # w1
                 + buf(8, out_pad, 4, 8)      # b1 (sublane-padded)
                 + buf(br, out_pad, 4, 8))    # output tile
    return state + tiles


def encoder_forward(x, edge_index, w1, b1, *, block_rows=None, a_hat_bf16=None):
    n, in_ch = x.shape
    out_ch = w1.shape[1]
    out_pad = _round_up(out_ch, 128)           # lane-dense output width
    br = _pick_block_rows(n) if block_rows is None else block_rows
    n_pad = _round_up(max(n, br), br)

    # A_hat (bf16, padded). Padded COLUMNS are zero: that is what masks the
    # padded x rows (which become tanh(b1) != 0 after the bias and then get
    # normalized) out of the propagation for real rows — do not remove it.
    if a_hat_bf16 is None:
        a_hat_bf16 = build_a_hat(edge_index, n, n_pad)

    # Zero-pad x rows and linear1 params. Zero w1/b1 columns keep the padded
    # output channels exactly zero, so the per-row L2 norm is unaffected.
    x_p = jnp.pad(x, ((0, n_pad - n), (0, 0))).astype(jnp.float32)
    w1_p = jnp.pad(w1, ((0, 0), (0, out_pad - out_ch))).astype(jnp.float32)
    b1_p = jnp.pad(b1, (0, out_pad - out_ch)).reshape(1, out_pad).astype(jnp.float32)

    nb = n_pad // br
    grid = (K_PROP + 1, nb)
    kernel = make_encoder_kernel(br)

    vmem_limit = int(min(max(_estimate_vmem_bytes(n_pad, out_pad, br, in_ch) * 5 // 4
                             + (2 << 20), 16 << 20), 128 << 20))

    out = pl.pallas_call(
        kernel,
        out_shape=jax.ShapeDtypeStruct((n_pad, out_pad), jnp.float32),
        grid_spec=pltpu.PrefetchScalarGridSpec(
            num_scalar_prefetch=0,
            grid=grid,
            in_specs=[
                # x: stream row tiles only in phase 0; pin to the last block
                # afterwards so no re-fetch happens during propagation.
                pl.BlockSpec((br, in_ch),
                             lambda p, i: (jnp.where(p == 0, i, nb - 1), 0)),
                pl.BlockSpec((in_ch, out_pad), lambda p, i: (0, 0)),  # w1 (resident)
                pl.BlockSpec((1, out_pad), lambda p, i: (0, 0)),      # b1 (resident)
                # A_hat: pinned to block 0 in phase 0 (not read there), row
                # tiles streamed only during the K propagation phases.
                pl.BlockSpec((br, n_pad),
                             lambda p, i: (jnp.where(p == 0, 0, i), 0)),
            ],
            # Output: pinned to block 0 until the final phase, so intermediate
            # phases never write back to HBM.
            out_specs=pl.BlockSpec((br, out_pad),
                                   lambda p, i: (jnp.where(p == K_PROP, i, 0), 0)),
            scratch_shapes=[
                pltpu.VMEM((n_pad, out_pad), jnp.bfloat16),        # h0 (resident)
                pltpu.VMEM((2, n_pad, out_pad), jnp.bfloat16),     # h_k ping-pong
            ],
        ),
        # Both axes carry state in VMEM scratch across iterations (h0 / h_k),
        # so they must stay "arbitrary" (a parallel row axis would split the
        # resident state across cores).
        compiler_params=pltpu.CompilerParams(
            dimension_semantics=("arbitrary", "arbitrary"),
            vmem_limit_bytes=vmem_limit),
    )(x_p, w1_p, b1_p, a_hat_bf16)

    return out[:n, :out_ch]


def reference_forward(x, edge_index, w1, b1):
    h = x @ w1 + b1
    h = jnp.tanh(h)
    norm = jnp.sqrt(jnp.sum(h * h, axis=1, keepdims=True))
    h = h / jnp.maximum(norm, NORM_EPS) * SCALING_FACTOR
    a_hat = gcn_norm_dense(edge_index, x.shape[0])
    h0 = h
    for _ in range(K_PROP):
        h = (1.0 - ALPHA) * (a_hat @ h) + ALPHA * h0
    return h


if __name__ == "__main__":
    key = jax.random.PRNGKey(0)
    num_nodes = 16
    in_channels = 8
    out_channels = 32

    k_x, k_w, k_b = jax.random.split(key, 3)
    x = jax.random.normal(k_x, (num_nodes, in_channels), jnp.float32)

    # Deterministic "linear1" params (nn.Linear-style uniform init bounds).
    bound = 1.0 / (in_channels ** 0.5)
    w1 = jax.random.uniform(k_w, (in_channels, out_channels), jnp.float32,
                            minval=-bound, maxval=bound)
    b1 = jax.random.uniform(k_b, (out_channels,), jnp.float32,
                            minval=-bound, maxval=bound)

    # Deterministic ring graph, edges in both directions: edge_index (2, E).
    nodes = jnp.arange(num_nodes)
    src = jnp.concatenate([nodes, (nodes + 1) % num_nodes])
    tgt = jnp.concatenate([(nodes + 1) % num_nodes, nodes])
    edge_index = jnp.stack([src, tgt], axis=0)

    out = encoder_forward(x, edge_index, w1, b1)
    out = jax.block_until_ready(out)

    ref = reference_forward(x, edge_index, w1, b1)
    assert out.shape == (num_nodes, out_channels)
    # bf16 A_hat / bf16 h0 / bf16 propagated-state operands (f32 accumulation)
    # introduce ~1e-3 relative drift vs. the pure-f32 reference.
    assert jnp.allclose(out, ref, atol=2e-2, rtol=2e-2)

    print("KERNEL_OK")
</pallas_src>

<mosaic_0001>
module attributes {stable_mosaic.version = 11 : i64} {
  func.func @encoder_kernel(%arg0: i32, %arg1: i32, %arg2: memref<16x8xf32, #tpu.memory_space<vmem>>, %arg3: memref<8x128xf32, #tpu.memory_space<vmem>>, %arg4: memref<1x128xf32, #tpu.memory_space<vmem>>, %arg5: memref<16x16xbf16, #tpu.memory_space<vmem>>, %arg6: memref<16x128xf32, #tpu.memory_space<vmem>>, %arg7: memref<16x128xbf16, #tpu.memory_space<vmem>>, %arg8: memref<2x16x128xbf16, #tpu.memory_space<vmem>>) attributes {dimension_semantics = [#tpu.dimension_semantics<arbitrary>, #tpu.dimension_semantics<arbitrary>], iteration_bounds = array<i64: 3, 1>, scalar_prefetch = 0 : i64, scratch_operands = 2 : i64, tpu.core_type = #tpu.core_type<tc>, window_params = [{transform_indices = @transform_0, window_bounds = array<i64: 16, 8>}, {pipeline_mode = #tpu.pipeline_mode<synchronous>, transform_indices = @transform_1, window_bounds = array<i64: 8, 128>}, {pipeline_mode = #tpu.pipeline_mode<synchronous>, transform_indices = @transform_2, window_bounds = array<i64: 1, 128>}, {transform_indices = @transform_3, window_bounds = array<i64: 16, 16>}, {transform_indices = @transform_4, window_bounds = array<i64: 16, 128>}]} {
    %c16_i32 = arith.constant 16 : i32
    %0 = arith.muli %arg1, %c16_i32 : i32
    %1 = tpu.assume_multiple %0, 16 : i32
    %c0_i32 = arith.constant 0 : i32
    %2 = arith.cmpi eq, %arg0, %c0_i32 : i32
    %3 = arith.extui %2 : i1 to i32
    %c0_i32_0 = arith.constant 0 : i32
    %4 = arith.cmpi ne, %3, %c0_i32_0 : i32
    scf.if %4 {
      %c0 = arith.constant 0 : index
      %c0_3 = arith.constant 0 : index
      %8 = vector.load %arg2[%c0, %c0_3] : memref<16x8xf32, #tpu.memory_space<vmem>>, vector<16x8xf32>
      %c0_4 = arith.constant 0 : index
      %c0_5 = arith.constant 0 : index
      %9 = vector.load %arg3[%c0_4, %c0_5] : memref<8x128xf32, #tpu.memory_space<vmem>>, vector<8x128xf32>
      %cst = arith.constant dense<0.000000e+00> : vector<16x128xf32>
      %10 = tpu.matmul %8, %9, %cst {dimension_numbers = #tpu.dot_dimension_numbers<[1], [0], [0], [1], [0, 0, 1, 1], [], []>} : vector<16x8xf32>, vector<8x128xf32>, vector<16x128xf32> -> vector<16x128xf32>
      %c0_6 = arith.constant 0 : index
      %c0_7 = arith.constant 0 : index
      %11 = vector.load %arg4[%c0_6, %c0_7] : memref<1x128xf32, #tpu.memory_space<vmem>>, vector<1x128xf32>
      %12 = vector.broadcast %11 : vector<1x128xf32> to vector<16x128xf32>
      %13 = arith.addf %10, %12 : vector<16x128xf32>
      %14 = math.tanh %13 : vector<16x128xf32>
      %15 = arith.mulf %14, %14 : vector<16x128xf32>
      %cst_8 = arith.constant dense<0.000000e+00> : vector<16xf32>
      %16 = vector.multi_reduction <add>, %15, %cst_8 [1] : vector<16x128xf32> to vector<16xf32>
      %17 = vector.shape_cast %16 : vector<16xf32> to vector<16x1xf32>
      %cst_9 = arith.constant 1.000000e-24 : f32
      %18 = vector.broadcast %cst_9 : f32 to vector<16x1xf32>
      %19 = arith.maximumf %17, %18 : vector<16x1xf32>
      %20 = math.rsqrt %19 : vector<16x1xf32>
      %cst_10 = arith.constant 1.800000e+00 : f32
      %21 = vector.broadcast %cst_10 : f32 to vector<16x1xf32>
      %22 = arith.mulf %20, %21 : vector<16x1xf32>
      %23 = vector.broadcast %22 : vector<16x1xf32> to vector<16x128xf32>
      %24 = arith.mulf %14, %23 : vector<16x128xf32>
      %25 = arith.truncf %24 : vector<16x128xf32> to vector<16x128xbf16>
      %26 = arith.index_cast %1 : i32 to index
      %c0_11 = arith.constant 0 : index
      %27 = vector.load %arg7[%26, %c0_11] : memref<16x128xbf16, #tpu.memory_space<vmem>>, vector<16x128xbf16>
      tpu.vector_store %arg7[%26, %c0_11], %25 {strides = array<i32>} : memref<16x128xbf16, #tpu.memory_space<vmem>>, vector<16x128xbf16>,
      %28 = arith.truncf %24 : vector<16x128xf32> to vector<16x128xbf16>
      %c0_12 = arith.constant 0 : index
      %29 = arith.index_cast %1 : i32 to index
      %c0_13 = arith.constant 0 : index
      %30 = vector.load %arg8[%c0_12, %29, %c0_13] : memref<2x16x128xbf16, #tpu.memory_space<vmem>>, vector<1x16x128xbf16>
      %31 = vector.shape_cast %30 : vector<1x16x128xbf16> to vector<16x128xbf16>
      %32 = vector.shape_cast %28 : vector<16x128xbf16> to vector<1x16x128xbf16>
      tpu.vector_store %arg8[%c0_12, %29, %c0_13], %32 {strides = array<i32>} : memref<2x16x128xbf16, #tpu.memory_space<vmem>>, vector<1x16x128xbf16>,
    } else {
    }
    %c0_i32_1 = arith.constant 0 : i32
    %5 = arith.cmpi sgt, %arg0, %c0_i32_1 : i32
    %6 = arith.extui %5 : i1 to i32
    %c0_i32_2 = arith.constant 0 : i32
    %7 = arith.cmpi ne, %6, %c0_i32_2 : i32
    scf.if %7 {
      %c1_i32 = arith.constant 1 : i32
      %8 = arith.subi %arg0, %c1_i32 : i32
      %c2_i32 = arith.constant 2 : i32
      %c0_i32_3 = arith.constant 0 : i32
      %9 = arith.cmpi eq, %c2_i32, %c0_i32_3 : i32
      %c1_i32_4 = arith.constant 1 : i32
      %10 = arith.select %9, %c1_i32_4, %c2_i32 : i32
      %11 = arith.remsi %8, %10 : i32
      %c0_i32_5 = arith.constant 0 : i32
      %12 = arith.cmpi ne, %11, %c0_i32_5 : i32
      %c0_i32_6 = arith.constant 0 : i32
      %13 = arith.cmpi slt, %11, %c0_i32_6 : i32
      %c0_i32_7 = arith.constant 0 : i32
      %14 = arith.cmpi slt, %10, %c0_i32_7 : i32
      %15 = arith.xori %13, %14 : i1
      %16 = arith.andi %15, %12 : i1
      %17 = arith.addi %11, %10 : i32
      %18 = arith.select %16, %17, %11 : i32
      %c2_i32_8 = arith.constant 2 : i32
      %c0_i32_9 = arith.constant 0 : i32
      %19 = arith.cmpi eq, %c2_i32_8, %c0_i32_9 : i32
      %c1_i32_10 = arith.constant 1 : i32
      %20 = arith.select %19, %c1_i32_10, %c2_i32_8 : i32
      %21 = arith.remsi %arg0, %20 : i32
      %c0_i32_11 = arith.constant 0 : i32
      %22 = arith.cmpi ne, %21, %c0_i32_11 : i32
      %c0_i32_12 = arith.constant 0 : i32
      %23 = arith.cmpi slt, %21, %c0_i32_12 : i32
      %c0_i32_13 = arith.constant 0 : i32
      %24 = arith.cmpi slt, %20, %c0_i32_13 : i32
      %25 = arith.xori %23, %24 : i1
      %26 = arith.andi %25, %22 : i1
      %27 = arith.addi %21, %20 : i32
      %28 = arith.select %26, %27, %21 : i32
      %c0 = arith.constant 0 : index
      %c0_14 = arith.constant 0 : index
      %29 = vector.load %arg5[%c0, %c0_14] : memref<16x16xbf16, #tpu.memory_space<vmem>>, vector<16x16xbf16>
      %30 = arith.index_cast %18 : i32 to index
      %c0_15 = arith.constant 0 : index
      %c0_16 = arith.constant 0 : index
      %31 = vector.load %arg8[%30, %c0_15, %c0_16] : memref<2x16x128xbf16, #tpu.memory_space<vmem>>, vector<1x16x128xbf16>
      %32 = vector.shape_cast %31 : vector<1x16x128xbf16> to vector<16x128xbf16>
      %cst = arith.constant dense<0.000000e+00> : vector<16x128xf32>
      %33 = tpu.matmul %29, %32, %cst {dimension_numbers = #tpu.dot_dimension_numbers<[1], [0], [0], [1], [0, 0, 1, 1], [], []>} : vector<16x16xbf16>, vector<16x128xbf16>, vector<16x128xf32> -> vector<16x128xf32>
      %cst_17 = arith.constant 6.500000e-01 : f32
      %34 = vector.broadcast %cst_17 : f32 to vector<16x128xf32>
      %35 = arith.mulf %34, %33 : vector<16x128xf32>
      %36 = arith.index_cast %1 : i32 to index
      %c0_18 = arith.constant 0 : index
      %37 = vector.load %arg7[%36, %c0_18] : memref<16x128xbf16, #tpu.memory_space<vmem>>, vector<16x128xbf16>
      %38 = arith.extf %37 : vector<16x128xbf16> to vector<16x128xf32>
      %cst_19 = arith.constant 3.500000e-01 : f32
      %39 = vector.broadcast %cst_19 : f32 to vector<16x128xf32>
      %40 = arith.mulf %39, %38 : vector<16x128xf32>
      %41 = arith.addf %35, %40 : vector<16x128xf32>
      %42 = arith.truncf %41 : vector<16x128xf32> to vector<16x128xbf16>
      %43 = arith.index_cast %28 : i32 to index
      %44 = arith.index_cast %1 : i32 to index
      %c0_20 = arith.constant 0 : index
      %45 = vector.load %arg8[%43, %44, %c0_20] : memref<2x16x128xbf16, #tpu.memory_space<vmem>>, vector<1x16x128xbf16>
      %46 = vector.shape_cast %45 : vector<1x16x128xbf16> to vector<16x128xbf16>
      %47 = vector.shape_cast %42 : vector<16x128xbf16> to vector<1x16x128xbf16>
      tpu.vector_store %arg8[%43, %44, %c0_20], %47 {strides = array<i32>} : memref<2x16x128xbf16, #tpu.memory_space<vmem>>, vector<1x16x128xbf16>,
      %c2_i32_21 = arith.constant 2 : i32
      %48 = arith.cmpi eq, %arg0, %c2_i32_21 : i32
      %49 = arith.extui %48 : i1 to i32
      %c0_i32_22 = arith.constant 0 : i32
      %50 = arith.cmpi ne, %49, %c0_i32_22 : i32
      scf.if %50 {
        %c0_23 = arith.constant 0 : index
        %c0_24 = arith.constant 0 : index
        %51 = vector.load %arg6[%c0_23, %c0_24] : memref<16x128xf32, #tpu.memory_space<vmem>>, vector<16x128xf32>
        tpu.vector_store %arg6[%c0_23, %c0_24], %41 {strides = array<i32>} : memref<16x128xf32, #tpu.memory_space<vmem>>, vector<16x128xf32>,
      } else {
      }
    } else {
    }
    return
  }
  func.func @transform_0(%arg0: i32, %arg1: i32) -> (i32, i32) {
    %c0_i32 = arith.constant 0 : i32
    %0 = arith.cmpi eq, %arg0, %c0_i32 : i32
    %c0_i32_0 = arith.constant 0 : i32
    %1 = arith.select %0, %arg1, %c0_i32_0 : i32
    %c0_i32_1 = arith.constant 0 : i32
    %c0_i32_2 = arith.constant 0 : i32
    return %1, %c0_i32_1 : i32, i32
  }
  func.func @transform_1(%arg0: i32, %arg1: i32) -> (i32, i32) {
    %c0_i32 = arith.constant 0 : i32
    %c0_i32_0 = arith.constant 0 : i32
    %c0_i32_1 = arith.constant 0 : i32
    return %c0_i32, %c0_i32_0 : i32, i32
  }
  func.func @transform_2(%arg0: i32, %arg1: i32) -> (i32, i32) {
    %c0_i32 = arith.constant 0 : i32
    %c0_i32_0 = arith.constant 0 : i32
    %c0_i32_1 = arith.constant 0 : i32
    return %c0_i32, %c0_i32_0 : i32, i32
  }
  func.func @transform_3(%arg0: i32, %arg1: i32) -> (i32, i32) {
    %c0_i32 = arith.constant 0 : i32
    %0 = arith.cmpi eq, %arg0, %c0_i32 : i32
    %c0_i32_0 = arith.constant 0 : i32
    %1 = arith.select %0, %c0_i32_0, %arg1 : i32
    %c0_i32_1 = arith.constant 0 : i32
    %c0_i32_2 = arith.constant 0 : i32
    return %1, %c0_i32_1 : i32, i32
  }
  func.func @transform_4(%arg0: i32, %arg1: i32) -> (i32, i32) {
    %c2_i32 = arith.constant 2 : i32
    %0 = arith.cmpi eq, %arg0, %c2_i32 : i32
    %c0_i32 = arith.constant 0 : i32
    %1 = arith.select %0, %arg1, %c0_i32 : i32
    %c0_i32_0 = arith.constant 0 : i32
    %c0_i32_1 = arith.constant 0 : i32
    return %1, %c0_i32_0 : i32, i32
  }
}

</mosaic_0001>

<bundles_post_ra>
// kernel: tpu_custom_call.1
= control target key start
LH: loop header
LB: loop body
LE: loop exit
PB: predicated region body
PF: predicated region fallthrough
CT: control target
= control target key end

     0   :  { %9 = vsyncpa [#allocation5], 0  ;;  %s864_s0 = inlined_call_operand.vmem [shape: f32[16,8], index: 0, kind: input, shape index: {}]   ;;  %s865_s1 = inlined_call_operand.vmem [shape: f32[8,128], index: 1, kind: input, shape index: {}]   ;;  %s866_s2 = inlined_call_operand.vmem [shape: f32[1,128], index: 2, kind: input, shape index: {}]   ;;  %s867_s3 = inlined_call_operand.vmem [shape: bf16[16,16], index: 3, kind: input, shape index: {}]   ;;  %s868_s4 = inlined_call_operand.hbm [shape: f32[16,128], index: 4, kind: output, shape index: {}]  }
   0x1   :  { %11 = vsyncpa [#allocation5 + $0x1], 0  ;;  %s784_s15 = smov 0   ;;  %s786_s16 = smov 0  }
   0x2   :  { %s788_s17 = smov 0  }
   0x3 LB: > { %s607_s18 = sadd.s32 4294967295, %s752_s17   ;;  %s608_s19 = sadd.s32 4294967294, %s752_s17   ;;  %s752_s17 = sphi %s788_s17, %s17_s17   ;;  %s748_s16 = sphi %s786_s16, %s871_s16   ;;  %s744_s15 = sphi %s784_s15, %s870_s15  }
   0x4   : > { %s29_s20 = sadd.s32 1, %s748_s16  ;;  %p613_p0 = scmp.ge.s32.totalorder %s752_s17, 1 }
   0x5   : > { %p31_p1 = scmp.ge.s32.totalorder %s29_s20, 3  ;;  %p209_p2 = scmp.lt.s32.totalorder %s752_s17, 4 }
   0x7   : > { %s873_s20 = smov (%p31_p1, %s29_s20), 0  ;;  %p210_p3 = pnand %p613_p0, %p209_p2 }
   0x8   : > { %p614_p4 = scmp.ne.s32.totalorder (!%p210_p3), %s744_s15, 0 }
   0x9   : > { %213 = sbr.rel (%p210_p3) target bundleno = 677 (0x2a5), region = 36 }
  0x10   : > { %272 = sbr.rel (%p614_p4) target bundleno = 413 (0x19d), region = 40  ;;  %v275_v0 = vld [vmem:[%s865_s1] sm:$0xff] (!%p614_p4)  ;;  %vm283_vm0 = vcmask (!%p614_p4), 64512   ;;  %v274_v2 = vld [vmem:[%s864_s0 + $0x8] sm:$0xff] (!%p614_p4) }
  0x11   : > { %v273_v1 = vld [vmem:[%s864_s0] sm:$0xff] (!%p614_p4)  ;;  %640 = vmatprep.subr.mxu0 (!%p614_p4), %v275_v0 }
  0x12   : > { %642 = vmatprep.mubr.msk.f32.mxu0 (!%p614_p4), %vm283_vm0, %v273_v1  ;;  %641 = vmatpush3.msra.mxu0 (!%p614_p4), %v275_v0  ;;  %v615_v3 = vld [vmem:[%s866_s2] ss:$0 sm:$0xff] (!%p614_p4) }
  0x13   : > { %643 = vmatmul.mubr.msk.f32.vlgmr.msra.gmra.mrb[0].mxu0 (!%p614_p4), %vm283_vm0, %v274_v2 }
  0xe6   : > { %v644_v4 = vpop.f32.mrb[0].mxu0 }
  0xe7   : > { %v356_v5 = vpop.f32.mrb[1].mxu0  ;;  %v362_v6 = vadd.f32 %v644_v4, %v615_v3 }
  0xe8   : > { %v357_v7 = vadd.f32 %v615_v3, %v356_v5 }
  0xea   : > { %691 = vtanh.f32 %v357_v7 }
  0xeb   : > { %693 = vtanh.f32 %v362_v6 }
  0xf4   : > { %v692_v8 = vpop.eup %691 }
  0xf5   : > { %v367_v9 = vmul.f32 %v692_v8, %v692_v8  ;;  %v694_v10 = vpop.eup %693 }
  0xf6   : > { %v368_v11 = vmul.f32 %v694_v10, %v694_v10 }
  0xf7   : > { %369 = vadd.xlane.f32.xlu0 %v367_v9 }
  0xfb   : > { %371 = vadd.xlane.f32.xlu0 %v368_v11 }
 0x184   : > { %v370_v12 = vpop.xlane.xlu0 %369 }
 0x185   : > { %v373_v13 = vmax.f32 %v370_v12, 1e-24 }
 0x187   : > { %695 = vrsqrt.f32 %v373_v13 }
 0x188   : > { %v372_v14 = vpop.xlane.xlu0 %371 }
 0x189   : > { %v374_v15 = vmax.f32 %v372_v14, 1e-24 }
 0x18b   : > { %697 = vrsqrt.f32 %v374_v15 }
 0x191   : > { %v696_v16 = vpop.eup %695 }
 0x192   : > { %v377_v17 = vmul.f32 1.8, %v696_v16 }
 0x194   : > { %v379_v20 = vmul.f32 %v692_v8, %v377_v17 }
 0x195   : > { %v698_v18 = vpop.eup %697 }
 0x196   : > { %v378_v19 = vmul.f32 1.8, %v698_v18 }
 0x198   : > { %v380_v21 = vmul.f32 %v694_v10, %v378_v19 }
 0x19a   : > { %v381_v22 = vpack.c.bf16 %v380_v21, %v379_v20 }
 0x19c   : > { %386 = vst [vmem:[#allocation2] sm:$0xff] %v381_v22  ;;  %389 = vst [vmem:[#allocation3] sm:$0xff] %v381_v22 }
 0x19d PF: > { %p618_p5 = scmp.le.s32.totalorder %s744_s15, 0 }
 0x19e   : > { %s619_s29 = sadd.s32 (!%p618_p5), 4294967295, %s744_s15  ;;  %v754_v23 = vmov (!%p618_p5), 0.0   ;;  %vm755_vm1 = vmmov (!%p618_p5), 0   ;;  %v699_v25 = vld [vmem:[%s867_s3] sm:$0xff] (!%p618_p5)   ;;  %vm429_vm2 = vcmask (!%p618_p5), 130048   ;;  %s408_s13 = ssub.s32 (!%p618_p5), 0, %s744_s15 }
 0x19f   : > { %393 = sbr.rel (%p618_p5) target bundleno = 653 (0x28d), region = 44  ;;  %645 = vmatprep.subr.bf16.mxu0 (!%p618_p5), %v754_v23  ;;  %p395_p6 = scmp.lt.s32.totalorder (!%p618_p5), %s619_s29, 0  ;;  %647 = vmatprep.mubr.msk.bf16.mxu0 (!%p618_p5), %vm755_vm1, %v754_v23 }
 0x1a0   : > { %s396_s30 = ssub.s32 (!%p618_p5), 0, %s619_s29  ;;  %s623_s14 = smin.u32 (!%p618_p5), %s744_s15, %s408_s13 }
 0x1a1   : > { %s620_s5 = smin.u32 (!%p618_p5), %s619_s29, %s396_s30  ;;  %s410_s21 = sand.u32 (!%p618_p5), 1, %s623_s14  }
 0x1a2   : > { %s398_s6 = sand.u32 (!%p618_p5), 1, %s620_s5   ;;  %p407_p8 = scmp.lt.s32.totalorder (!%p618_p5), %s744_s15, 0 }
 0x1a3   : > { %s399_s7 = ssub.s32 (!%p618_p5), 0, %s398_s6  ;;  %s411_s22 = ssub.s32 (!%p618_p5), 0, %s410_s21  ;;  %v480_v26 = vld [vmem:[#allocation2] sm:$0xff] (!%p618_p5) }
 0x1a4   : > { %v481_v27 = vunpack.c.l.bf16 (!%p618_p5), %v480_v26  ;;  %v482_v28 = vunpack.c.h.bf16 (!%p618_p5), %v480_v26  ;;  %p630_p10 = scmp.ne.s32.totalorder (!%p618_p5), %s744_s15, 2 }
 0x1a6   : > { %s875_s7 = smov (!%p395_p6, %s399_s7), %s398_s6  ;;  %s879_s22 = smov (!%p407_p8, %s411_s22), %s410_s21  ;;  %v483_v30 = vmul.f32 0.35, %v481_v27  ;;  %v484_v33 = vmul.f32 0.35, %v482_v28 }
 0x1a7   : > { %p622_p7 = scmp.lt.s32.totalorder %s875_s7, 0  ;;  %s405_s8 = sadd.s32 2, %s875_s7 }
 0x1a8   : > { %p625_p9 = scmp.lt.s32.totalorder %s879_s22, 0  ;;  %s417_s23 = sadd.s32 2, %s879_s22 }
 0x1a9   : > { %s877_s8 = smov (!%p622_p7, %s405_s8), %s875_s7 }
 0x1aa   : > { %s626_s9 = sshll.u32 %s877_s8, 3  ;;  %s881_s23 = smov (!%p625_p9, %s417_s23), %s879_s22 }
 0x1ab   : > { %s422_s10 = scalar_lea.vmem [#allocation3], %s626_s9  ;;  %s629_s24 = sshll.u32 %s881_s23, 3 }
 0x1ac   : > { %v423_v24 = vld [vmem:[%s422_s10] sm:$0xff]  ;;  %s490_s25 = scalar_lea.vmem [#allocation3], %s629_s24 }
 0x1ad   : > { %646 = vmatpush3.bf16.msra.mxu0 %v423_v24 }
 0x1b0   : > { %648 = vmatmul.mubr.msk.bf16.vlgmr.msra.gmra.mrb[0].mxu0 %vm429_vm2, %v699_v25 }
 0x283   : > { %v467_v29 = vpop.f32.mrb[0].mxu0 }
 0x284   : > { %v474_v31 = vmul.f32 0.65, %v467_v29  ;;  %v649_v32 = vpop.f32.mrb[1].mxu0 }
 0x285   : > { %v470_v34 = vpop.f32.mrb[2].mxu0 }
 0x286   : > { %v475_v35 = vmul.f32 0.65, %v470_v34  ;;  %v650_v36 = vpop.f32.mrb[3].mxu0  ;;  %v485_v37 = vadd.f32 %v483_v30, %v474_v31  ;;  %495 = sbr.rel (%p630_p10) target bundleno = 653 (0x28d), region = 48 }
 0x288   : > { %v486_v38 = vadd.f32 %v484_v33, %v475_v35  ;;  %496 = vst [vmem:[#allocation4] sm:$0xff] (!%p630_p10), %v485_v37 }
 0x28a   : > { %v487_v39 = vpack.c.bf16 %v486_v38, %v485_v37  ;;  %497 = vst [vmem:[#allocation4 + $0x8] sm:$0xff] (!%p630_p10), %v486_v38 }
 0x28c   : > { %491 = vst [vmem:[%s490_s25] sm:$0xff] %v487_v39 }
 0x28d PF: > { %p830_p11 = scmp.eq.s32.totalorder %s607_s18, 2  ;;  %s756_s27 = smov [#allocation4]  }
 0x28e   : > { %s514_s28 = sshll.u32 %s756_s27, 4  ;;  %s515_s28 = int_to_ptr.vmem [resolvable:$true] %s514_s28 }
 0x28f   : > { %s700_s29 = scalar_lea.vmem %s515_s28, 256  ;;  %s706_s15 = scalar_lea.vmem %s515_s28, 512 }
 0x290   : > { %p701_p12 = scmp.ne.s32.totalorder %s515_s28, %s700_s29  ;;  %p707_p1 = scmp.lt.s32.totalorder %s515_s28, %s515_s28 }
 0x291   : > { %p708_p2 = scmp.lt.s32.totalorder %s706_s15, %s700_s29 }
 0x292   : > { %p702_p13 = pnand %p701_p12, %p830_p11 }
 0x293   : > { %p709_p3 = por %p708_p2, %p707_p1 }
 0x294   : > { %p703_p0 = pneg %p702_p13 }
 0x296   : > { %p710_p4 = pnand %p709_p3, %p703_p0 }
 0x298   : > { %713 = shalt.err (!%p710_p4)
}
 0x299   : > { %s714_s5 = scalar_lea.hbm %s868_s4, 256 }
 0x29a   : > { %p715_p5 = scmp.ne.s32.totalorder %s868_s4, %s714_s5  ;;  %p720_p8 = scmp.lt.u32.totalorder %s714_s5, %s868_s4 }
 0x29c   : > { %p716_p6 = pnand %p715_p5, %p830_p11 }
 0x29e   : > { %p717_p7 = pneg %p716_p6 }
 0x2a0   : > { %p722_p9 = pnand %p720_p8, %p717_p7 }
 0x2a2   : > { %725 = shalt.err (!%p722_p9)
}
 0x2a3   : > { %s757_s10 = smov 128   ;;  %s758_s11 = smov 8  }
 0x2a4   : > { %652 = dma.vmem_to_hbm [thread:$0]  (%p830_p11), %s515_s28, 256, %s868_s4, [#allocation5], %s757_s10, %s757_s10, %s758_s11  }
 0x2a5 PF: > { %p660_p10 = scmp.ge.s32.totalorder %s752_s17, 2  ;;  %p661_p12 = scmp.eq.s32.totalorder %s608_s19, 2 }
 0x2a7   : > { %p656_p13 = pnand %p661_p12, %p660_p10 }
 0x2a9   : > { %739 = dma.done.wait (!%p656_p13), [#allocation5], 256  }
 0x2aa   : > { %741 = vsyncadd (!%p656_p13), [#allocation5], 4294967040  ;;  %s17_s17 = sadd.s32 1, %s752_s17   ;;  %s870_s15 = smov %s748_s16 }
 0x2ab   : > { %p14_p0 = scmp.ge.s32.totalorder %s17_s17, 5   ;;  %s871_s16 = smov %s873_s20 }
 0x2ad   :  { %16 = sbr.rel (!%p14_p0) target bundleno = 3 (0x3), region = 91 }
 0x2b4   :  { %535 = vsyncpa [#allocation5], 1 }
 0x2b5   :  { %537 = vsyncpa [#allocation5 + $0x1], 1 }

</bundles_post_ra>
